<compile_context>
chip_gen: v5e
topology: v5e:2x2
jax: 0.10.0
libtpu: 0.0.40
codegen_flags: <defaults>
</compile_context>

<pallas_src>
import functools

import jax
import jax.numpy as jnp
from jax.experimental import pallas as pl
from jax.experimental.pallas import tpu as pltpu


def _repeat_time_kernel(x_ref, e_ref, o_ref):
    # x: (tm, W), e: (W, W*T) one-hot expansion (e[w, w*T + t] = 1), o: (tm, W*T).
    # MXU matmul with a 0/1 matrix == exact element replication along the new time dim,
    # but with a lane-dense (>=128-wide) output so stores are unmasked full vregs.
    o_ref[...] = jnp.dot(
        x_ref[...], e_ref[...], preferred_element_type=jnp.float32
    ).astype(o_ref.dtype)


def direct_spike_input(x_nchw, n_steps, block_rows=64):
    """Pallas implementation of DirectInputEncoder.forward.

    x_nchw: (N, C, H, W)  ->  (N, C, H, W, T) with out[..., t] == x for every t.
    """
    n, c, h, w = x_nchw.shape
    t = int(n_steps)
    m = n * c * h

    # Row-major flatten: row index = (n, c, h), columns = W.  Free reshape (no copy).
    x2 = x_nchw.reshape(m, w)

    # Row tile: multiple of 8 (sublane), pad rows up to a tile multiple if needed.
    tm = min(block_rows, m)
    tm = max(8, (tm + 7) // 8 * 8)
    m_pad = (m + tm - 1) // tm * tm
    if m_pad != m:
        x2 = jnp.pad(x2, ((0, m_pad - m), (0, 0)))

    # One-hot "repeat along time" expansion matrix: e[w_i, w_i*T + t_i] = 1.
    # (W, W*T) is tiny (a few KiB) and stays resident in VMEM across grid steps.
    cols = jnp.arange(w * t, dtype=jnp.int32)
    rows = jnp.arange(w, dtype=jnp.int32)
    e = (cols[None, :] // t == rows[:, None]).astype(x2.dtype)

    grid = (m_pad // tm,)
    out2 = pl.pallas_call(
        _repeat_time_kernel,
        out_shape=jax.ShapeDtypeStruct((m_pad, w * t), x2.dtype),
        grid=grid,
        in_specs=[
            pl.BlockSpec((tm, w), lambda i: (i, 0)),        # streamed row tiles
            pl.BlockSpec((w, w * t), lambda i: (0, 0)),     # resident expansion matrix
        ],
        out_specs=pl.BlockSpec((tm, w * t), lambda i: (i, 0)),
        compiler_params=pltpu.CompilerParams(
            # Row axis is embarrassingly parallel -> pipelined + split across the
            # two TensorCores on v7x.
            dimension_semantics=("parallel",),
        ),
    )(x2, e)

    # (m, W*T) -> (N, C, H, W, T): pure reshape of contiguous data, no transpose.
    return out2[:m].reshape(n, c, h, w, t)


class DirectInputEncoder:
    """Thin wrapper mirroring the PyTorch module interface."""

    def __init__(self, n_steps: int):
        self.n_steps = int(n_steps)

    def __call__(self, x):
        return direct_spike_input(x, self.n_steps)


if __name__ == "__main__":
    N, C, H, W, T = 2, 4, 16, 16, 8

    x = jax.random.normal(jax.random.PRNGKey(0), (N, C, H, W), jnp.float32)

    encoder = DirectInputEncoder(n_steps=T)
    fwd = jax.jit(functools.partial(direct_spike_input, n_steps=T))
    out = jax.block_until_ready(fwd(x))

    assert out.shape == (N, C, H, W, T), out.shape
    # Reference semantics: x.unsqueeze(-1).repeat(1, 1, 1, 1, T)
    ref = jnp.broadcast_to(x[..., None], (N, C, H, W, T))
    assert bool(jnp.array_equal(out, ref)), "mismatch vs. direct_spike_input reference"
    assert bool(jnp.all(jnp.isfinite(out)))
    print("KERNEL_OK")
</pallas_src>

<mosaic_0001>
module attributes {stable_mosaic.version = 11 : i64} {
  func.func @_repeat_time_kernel(%arg0: i32, %arg1: memref<64x16xf32, #tpu.memory_space<vmem>>, %arg2: memref<16x128xf32, #tpu.memory_space<vmem>>, %arg3: memref<64x128xf32, #tpu.memory_space<vmem>>) attributes {dimension_semantics = [#tpu.dimension_semantics<parallel>], iteration_bounds = array<i64: 2>, scalar_prefetch = 0 : i64, scratch_operands = 0 : i64, tpu.core_type = #tpu.core_type<tc>, window_params = [{transform_indices = @transform_0, window_bounds = array<i64: 64, 16>}, {pipeline_mode = #tpu.pipeline_mode<synchronous>, transform_indices = @transform_1, window_bounds = array<i64: 16, 128>}, {transform_indices = @transform_2, window_bounds = array<i64: 64, 128>}]} {
    %c0 = arith.constant 0 : index
    %c0_0 = arith.constant 0 : index
    %0 = vector.load %arg1[%c0, %c0_0] : memref<64x16xf32, #tpu.memory_space<vmem>>, vector<64x16xf32>
    %c0_1 = arith.constant 0 : index
    %c0_2 = arith.constant 0 : index
    %1 = vector.load %arg2[%c0_1, %c0_2] : memref<16x128xf32, #tpu.memory_space<vmem>>, vector<16x128xf32>
    %cst = arith.constant dense<0.000000e+00> : vector<64x128xf32>
    %2 = tpu.matmul %0, %1, %cst {dimension_numbers = #tpu.dot_dimension_numbers<[1], [0], [0], [1], [0, 0, 1, 1], [], []>} : vector<64x16xf32>, vector<16x128xf32>, vector<64x128xf32> -> vector<64x128xf32>
    %c0_3 = arith.constant 0 : index
    %c0_4 = arith.constant 0 : index
    %3 = vector.load %arg3[%c0_3, %c0_4] : memref<64x128xf32, #tpu.memory_space<vmem>>, vector<64x128xf32>
    tpu.vector_store %arg3[%c0_3, %c0_4], %2 {strides = array<i32>} : memref<64x128xf32, #tpu.memory_space<vmem>>, vector<64x128xf32>,
    return
  }
  func.func @transform_0(%arg0: i32) -> (i32, i32) {
    %c0_i32 = arith.constant 0 : i32
    %c0_i32_0 = arith.constant 0 : i32
    return %arg0, %c0_i32 : i32, i32
  }
  func.func @transform_1(%arg0: i32) -> (i32, i32) {
    %c0_i32 = arith.constant 0 : i32
    %c0_i32_0 = arith.constant 0 : i32
    %c0_i32_1 = arith.constant 0 : i32
    return %c0_i32, %c0_i32_0 : i32, i32
  }
  func.func @transform_2(%arg0: i32) -> (i32, i32) {
    %c0_i32 = arith.constant 0 : i32
    %c0_i32_0 = arith.constant 0 : i32
    return %arg0, %c0_i32 : i32, i32
  }
}

</mosaic_0001>

<bundles_post_ra>
// kernel: direct_spike_input.1
= control target key start
LH: loop header
LB: loop body
LE: loop exit
PB: predicated region body
PF: predicated region fallthrough
CT: control target
= control target key end

     0   :  { %7 = vsyncpa [#allocation3], 0  ;;  %s576_s0 = inlined_call_operand.hbm [shape: f32[128,16], index: 0, kind: input, shape index: {}]   ;;  %s577_s1 = inlined_call_operand.vmem [shape: f32[16,128], index: 1, kind: input, shape index: {}]   ;;  %s578_s2 = inlined_call_operand.vmem [shape: f32[128,128], index: 2, kind: output, shape index: {}]  }
   0x1   :  { %9 = vsyncpa [#allocation3 + $0x1], 0  ;;  %s471_s9 = smov 0   ;;  %s473_s10 = smov 0  }
   0x2   :  { %s475_s11 = smov 0   ;;  %s477_s12 = smov 0  }
   0x3 LB: > { %s319_s13 = sadd.s32 4294967295, %s452_s12   ;;  %s491_s14 = sadd.s32 1, %s452_s12   ;;  %s452_s12 = sphi %s477_s12, %s585_s12   ;;  %s448_s11 = sphi %s475_s11, %s584_s11   ;;  %s444_s10 = sphi %s473_s10, %s583_s10   ;;  %s440_s9 = sphi %s471_s9, %s582_s9  }
   0x4   : > { %s19_s15 = ssub.s32 %s452_s12, %s491_s14  ;;  %s22_s16 = sadd.s32 1, %s448_s11 }
   0x5   : > { %p20_p0 = scmp.eq.s32.totalorder %s19_s15, 0  ;;  %p29_p1 = scmp.ne.s32.totalorder %s448_s11, %s444_s10 }
   0x6   : > { %p30_p2 = scmp.eq.s32.totalorder %s452_s12, 0  ;;  %p35_p3 = scmp.ne.s32.totalorder %s444_s10, %s440_s9 }
   0x7   : > { %s501_s17 = scalar_select %p20_p0, %s448_s11, %s22_s16  }
   0x8   : > { %p503_p4 = por %p30_p2, %p29_p1  ;;  %p36_p5 = scmp.eq.s32.totalorder %s319_s13, 0 }
   0x9   : > { %p353_p6 = scmp.lt.s32.totalorder %s452_s12, 2  ;;  %s109_s20 = sand.u32 1, %s448_s11  }
   0xa   : > { %p510_p7 = por %p36_p5, %p35_p3  ;;  %s323_s21 = sshll.u32 %s109_s20, 6 }
   0xb   : > { %s340_s22 = sshll.u32 %s452_s12, 6  ;;  %s113_s26 = scalar_lea.vmem [#allocation2], %s323_s21 }
   0xc   : > { %s118_s25 = scalar_lea.hbm %s576_s0, %s340_s22  ;;  %s121_s27 = sshll.u32 %s113_s26, 4  ;;  %s122_s27 = int_to_ptr.vmem [resolvable:$true] %s121_s27 }
   0xd   : > { %s119_s28 = sshll.u32 %s118_s25, 4  ;;  %p521_p8 = pnand %p353_p6, %p503_p4  ;;  %s120_s28 = int_to_ptr.hbm [resolvable:$true] %s119_s28 }
   0xe   : > { %p326_p9 = scmp.ge.s32.totalorder %s452_s12, 1  ;;  %s110_s30 = scalar_lea.sflag [#allocation3], %s109_s20 }
   0xf   : > { %s388_s3 = sshra.s32 %s120_s28, 4  ;;  %p392_p11 = pneg %p521_p8  ;;  %s389_s3 = int_to_ptr.hbm [resolvable:$true] %s388_s3 }
  0x10   : > { %s390_s4 = scalar_lea.hbm %s389_s3, 64  ;;  %s395_s7 = scalar_lea.hbm %s576_s0, 128 }
  0x11   : > { %p391_p10 = scmp.ne.s32.totalorder %s389_s3, %s390_s4  ;;  %p396_p0 = scmp.lt.s32.totalorder %s389_s3, %s576_s0 }
  0x12   : > { %p397_p1 = scmp.lt.s32.totalorder %s395_s7, %s390_s4 }
  0x13   : > { %p393_p12 = pnand %p392_p11, %p391_p10 }
  0x14   : > { %p398_p2 = por %p397_p1, %p396_p0 }
  0x15   : > { %p394_p13 = pneg %p393_p12 }
  0x17   : > { %p399_p3 = pnand %p398_p2, %p394_p13 }
  0x19   : > { %402 = shalt.err (!%p399_p3)
}
  0x1a   : > { %s454_s15 = smov 128   ;;  %s455_s16 = smov 8  }
  0x1b   : > { %352 = dma.hbm_to_vmem [thread:$0]  (!%p521_p8), %s120_s28, 1024, %s122_s27, %s110_s30, %s454_s15, %s454_s15, %s455_s16  }
  0x1c   : > { %p129_p4 = scmp.lt.s32.totalorder %s452_s12, 3 }
  0x1e   : > { %p130_p5 = pnand %p326_p9, %p129_p4 }
  0x1f   : > { %s135_s18 = sand.u32 (!%p130_p5), 1, %s444_s10  }
  0x20   : > { %133 = sbr.rel (%p130_p5) target bundleno = 184 (0xb8), region = 28  ;;  %s327_s20 = sshll.u32 (!%p130_p5), %s135_s18, 6 }
  0x21   : > { %s136_s21 = scalar_lea.sflag (!%p130_p5), [#allocation3], %s135_s18  ;;  %s139_s22 = scalar_lea.vmem (!%p130_p5), [#allocation2], %s327_s20 }
  0x25   : > { %435 = dma.done.wait (%p510_p7), %s136_s21, 1024  }
  0x26   : > { %437 = vsyncadd (%p510_p7), %s136_s21, 4294966272  ;;  %v177_v0 = vld [vmem:[%s577_s1 + $0x8] sm:$0xff]  ;;  %v176_v1 = vld [vmem:[%s577_s1] sm:$0xff]  ;;  %vm178_vm0 = vcmask 130048   ;;  %s328_s19 = sshll.u32 %s319_s13, 3 }
  0x27   : > { %342 = vmatpush.msra.mxu2 %v177_v0  ;;  %343 = vmatpush.msra.mxu3 %v177_v0  ;;  %v172_v2 = vld [vmem:[%s139_s22 + $0x20] sm:$0xff]  ;;  %v174_v3 = vld [vmem:[%s139_s22 + $0x30] sm:$0xff]  ;;  %v173_v6 = vld [vmem:[%s139_s22 + $0x28] sm:$0xff]  ;;  %p163_p6 = scmp.lt.s32.totalorder %s328_s19, 15 }
  0x28   : > { %217 = vmatpush.msra.mxu0 %v177_v0  ;;  %341 = vmatpush.msra.mxu1 %v177_v0  ;;  %v168_v4 = vld [vmem:[%s139_s22] sm:$0xff]  ;;  %v170_v5 = vld [vmem:[%s139_s22 + $0x10] sm:$0xff]  ;;  %v175_v7 = vld [vmem:[%s139_s22 + $0x38] sm:$0xff] }
  0x29   : > { %345 = vmatpush.msra.mxu2 %v176_v1  ;;  %346 = vmatpush.msra.mxu3 %v176_v1  ;;  %v169_v8 = vld [vmem:[%s139_s22 + $0x8] sm:$0xff]  ;;  %v171_v9 = vld [vmem:[%s139_s22 + $0x18] sm:$0xff]  ;;  %s587_s19 = smov (!%p163_p6, %s328_s19), 15 }
  0x2a   : > { %334 = vmatmul.msk.f32.vlgmr.msra.gmra.mxu2 %vm178_vm0, %v172_v2  ;;  %336 = vmatmul.msk.f32.vlgmr.msra.gmra.mxu3 %vm178_vm0, %v174_v3  ;;  %s329_s27 = sshll.u32 %s587_s19, 3 }
  0x2b   : > { %218 = vmatpush.msra.mxu0 %v176_v1  ;;  %344 = vmatpush.msra.mxu1 %v176_v1  ;;  %s166_s30 = scalar_lea.vmem %s578_s2, %s329_s27 }
  0x2c   : > { %330 = vmatmul.msk.f32.vlgmr.msra.gmra.mxu0 %vm178_vm0, %v168_v4  ;;  %332 = vmatmul.msk.f32.vlgmr.msra.gmra.mxu1 %vm178_vm0, %v170_v5 }
  0x32   : > { %335 = vmatmul.msk.f32.gmra.mxu2 %vm178_vm0, %v173_v6  ;;  %337 = vmatmul.msk.f32.gmra.mxu3 %vm178_vm0, %v175_v7 }
  0x34   : > { %331 = vmatmul.msk.f32.gmra.mxu0 %vm178_vm0, %v169_v8  ;;  %333 = vmatmul.msk.f32.gmra.mxu1 %vm178_vm0, %v171_v9 }
  0xa9   : > { %v220_v10 = vpop.f32.mrf.mxu0  ;;  %v226_v11 = vpop.f32.mrf.mxu1 }
  0xaa   : > { %244 = vst [vmem:[%s166_s30] sm:$0xff] %v220_v10 }
  0xab   : > { %246 = vst [vmem:[%s166_s30 + $0x10] sm:$0xff] %v226_v11 }
  0xad   : > { %v232_v12 = vpop.f32.mrf.mxu2  ;;  %v238_v13 = vpop.f32.mrf.mxu3 }
  0xae   : > { %248 = vst [vmem:[%s166_s30 + $0x20] sm:$0xff] %v232_v12 }
  0xaf   : > { %250 = vst [vmem:[%s166_s30 + $0x30] sm:$0xff] %v238_v13 }
  0xb1   : > { %v223_v14 = vpop.f32.mrf.mxu0  ;;  %v229_v15 = vpop.f32.mrf.mxu1 }
  0xb2   : > { %245 = vst [vmem:[%s166_s30 + $0x8] sm:$0xff] %v223_v14 }
  0xb3   : > { %247 = vst [vmem:[%s166_s30 + $0x18] sm:$0xff] %v229_v15 }
  0xb5   : > { %v235_v16 = vpop.f32.mrf.mxu2  ;;  %v241_v17 = vpop.f32.mrf.mxu3 }
  0xb6   : > { %249 = vst [vmem:[%s166_s30 + $0x28] sm:$0xff] %v235_v16 }
  0xb7   : > { %251 = vst [vmem:[%s166_s30 + $0x38] sm:$0xff] %v241_v17 }
  0xb8 PF: > { %p12_p7 = scmp.ge.s32.totalorder %s491_s14, 4   ;;  %s582_s9 = smov %s444_s10 }
  0xb9   : > { %s583_s10 = smov %s448_s11  ;;  %s584_s11 = smov %s501_s17 }
  0xba   : > { %s585_s12 = smov %s491_s14  ;;  %14 = sbr.rel (!%p12_p7) target bundleno = 3 (0x3), region = 68 }
  0xbf   :  { %274 = vsyncpa [#allocation3], 1 }
  0xc0   :  { %276 = vsyncpa [#allocation3 + $0x1], 1 }

</bundles_post_ra>
